<compile_context>
chip_gen: v6e
topology: v6e:2x2x1
jax: 0.10.0
libtpu: 0.0.40
codegen_flags: <defaults>
</compile_context>

<pallas_src>
import functools

import jax
import jax.numpy as jnp
from jax.experimental import pallas as pl
from jax.experimental.pallas import tpu as pltpu

_LANE = 128
_SUB = 8
_DEFAULT_BLOCK_SUB = 4096      # sublanes per grid step (8 MiB of f32 buffering)
_MIN_PALLAS_ELEMS = 1 << 20    # below this, XLA's fused reduction beats launch cost
_VMEM_LIMIT_BYTES = 32 * 1024 * 1024


def _round_up(x: int, m: int) -> int:
    return (x + m - 1) // m * m


@functools.lru_cache(maxsize=1)
def _tensorcores_per_device() -> int:
    """Best-effort TensorCore count behind one JAX device (megacore split)."""
    try:
        dev = jax.devices()[0]
        n = getattr(dev, "num_cores", None)
        if isinstance(n, int) and n > 0:
            return n
        kind = str(getattr(dev, "device_kind", "")).lower()
        if "lite" in kind or "v5e" in kind or "v6" in kind:
            return 1                      # v5e / v6e: single TensorCore
        if "v4" in kind or "v5p" in kind or "v5" in kind or "v7" in kind:
            return 2                      # megacore (v4/v5p) and v7x: 2 TCs
        return 1
    except Exception:
        return 1


def _make_sum_kernel(rows: int, row_blocks: int, block_sub: int,
                     needs_mask: bool, has_clamped: bool):
    """Accumulates sum|diff/t|, sum diff, sum diff^2 into a (3, 8, 128)
    vreg-shaped accumulator (one output block per core-split)."""
    last_block = row_blocks - 1
    tail_rows = rows - last_block * block_sub   # valid rows in the final block

    def kernel(pred_ref, tgt_ref, acc_ref):
        c = pl.program_id(0)                    # core-split index ("parallel")
        i = pl.program_id(1)                    # reduction step   ("arbitrary")
        steps = pl.num_programs(1)

        @pl.when(i == 0)
        def _():
            acc_ref[...] = jnp.zeros_like(acc_ref)

        blk = c * steps + i                     # global row-block for this step

        def partials():
            o = pred_ref[...].astype(jnp.float32)
            t = tgt_ref[...].astype(jnp.float32)
            diff = t - o
            # EUP reciprocal (idle slot) + one Newton-Raphson refinement on the
            # VPU (~1e-6 rel.) instead of the ~4-6 VALU-op exact divide.
            r = pl.reciprocal(t, approx=True)
            r = r * (2.0 - t * r)
            return jnp.abs(diff * r), diff, diff * diff

        def accumulate(ape, d, d2):
            # Fold (block_sub, 128) -> (8, 128): pure VPU vadds, no XLU reduce.
            acc_ref[0] += ape.reshape(-1, _SUB, _LANE).sum(axis=0)
            acc_ref[1] += d.reshape(-1, _SUB, _LANE).sum(axis=0)
            acc_ref[2] += d2.reshape(-1, _SUB, _LANE).sum(axis=0)

        def hot_body():
            ape, d, d2 = partials()
            accumulate(ape, d, d2)

        # Hot path: completely unmasked.  The 1.0-padding of BOTH tensors in
        # _prep2d makes the in-array data pad contribute exactly zero.
        if needs_mask:
            pl.when(blk < last_block)(hot_body)
        elif has_clamped:
            pl.when(blk < row_blocks)(hot_body)
        else:
            hot_body()

        if needs_mask:
            # Only the globally-last block can read past the (row-padded)
            # array; a single static sublane-row compare masks it.
            @pl.when(blk == last_block)
            def _():
                ape, d, d2 = partials()
                row = jax.lax.broadcasted_iota(jnp.int32, (block_sub, _LANE), 0)
                valid = row < tail_rows
                accumulate(jnp.where(valid, ape, 0.0),
                           jnp.where(valid, d, 0.0),
                           jnp.where(valid, d2, 0.0))

    return kernel


def _pallas_partial_sums(pred2d, tgt2d, block_sub: int):
    """Returns a (3,) f32 array: [sum |diff/t|, sum diff, sum diff^2]."""
    rows = pred2d.shape[0]                      # multiple of 8 (padded in _prep2d)
    block_sub = max(_SUB, min(_round_up(block_sub, _SUB), rows))
    row_blocks = pl.cdiv(rows, block_sub)
    n_cores = max(1, min(_tensorcores_per_device(), row_blocks))
    steps = pl.cdiv(row_blocks, n_cores)
    has_clamped = (n_cores * steps) != row_blocks
    needs_mask = (rows % block_sub) != 0
    last_block = row_blocks - 1

    def in_map(c, i):
        # Clamp so the DMA never targets a fully out-of-range block; the kernel
        # skips accumulation for those (rare) clamped steps.
        return (jnp.minimum(c * steps + i, last_block), 0)

    kernel = _make_sum_kernel(rows, row_blocks, block_sub, needs_mask, has_clamped)

    partials = pl.pallas_call(
        kernel,
        out_shape=jax.ShapeDtypeStruct((n_cores, 3, _SUB, _LANE), jnp.float32),
        grid_spec=pltpu.PrefetchScalarGridSpec(
            num_scalar_prefetch=0,
            grid=(n_cores, steps),
            in_specs=[
                pl.BlockSpec((block_sub, _LANE), in_map),
                pl.BlockSpec((block_sub, _LANE), in_map),
            ],
            # Output accumulator: resident across the "arbitrary" axis, one
            # block per core-split along the "parallel" axis.
            out_specs=pl.BlockSpec((None, 3, _SUB, _LANE), lambda c, i: (c, 0, 0, 0)),
        ),
        compiler_params=pltpu.CompilerParams(
            dimension_semantics=("parallel", "arbitrary"),
            vmem_limit_bytes=_VMEM_LIMIT_BYTES),
    )(pred2d, tgt2d)

    return partials.sum(axis=(0, 2, 3))         # tiny fused follow-up reduce: (3,)


def _prep2d(x):
    """Lane-dense (rows, 128) view with rows a multiple of 8.
    Zero-copy when x.size % 1024 == 0.  Padding value 1.0 in BOTH tensors makes
    padded elements contribute exactly zero to every partial sum."""
    if x.dtype not in (jnp.float32, jnp.bfloat16):
        x = x.astype(jnp.float32)
    flat = x.reshape(-1)
    pad = (-flat.shape[0]) % (_SUB * _LANE)
    if pad:
        flat = jnp.pad(flat, (0, pad), constant_values=1)
    return flat.reshape(-1, _LANE)


@functools.partial(jax.jit, static_argnames=("block_sub", "force_pallas"))
def mape_loss(output, target, variance_penalty=0.0, *,
              block_sub=_DEFAULT_BLOCK_SUB, force_pallas=False):
    """Pallas implementation of MAPELoss.forward(output, target)."""
    assert output.shape == target.shape
    use_std = output.shape[0] > 1               # `len(output) > 1` is static
    n = output.size

    # Small inputs: a fused XLA reduction beats kernel launch + grid overhead.
    if not force_pallas and n < _MIN_PALLAS_ELEMS:
        o = output.astype(jnp.float32)
        t = target.astype(jnp.float32)
        diff = t - o
        mape = jnp.mean(jnp.abs(diff / t))
        if use_std:
            return mape + variance_penalty * jnp.std(diff, ddof=1)
        return mape

    pred2d = _prep2d(output)
    tgt2d = _prep2d(target)
    sums = _pallas_partial_sums(pred2d, tgt2d, block_sub)
    s_ape, s_d, s_d2 = sums[0], sums[1], sums[2]

    nf = jnp.float32(n)
    mape = s_ape / nf
    if not use_std:
        return mape
    mean_d = s_d / nf
    # Single-pass unbiased variance (ddof=1, matches torch.std).  Note: can
    # cancel in f32 when |mean(diff)| >> std(diff); a two-pass scheme would
    # cost a second full read of the inputs.
    # TODO(synk): consider a shifted two-pass variance if diff carries a large bias.
    var = (s_d2 - nf * mean_d * mean_d) / (nf - 1.0)
    var = jnp.maximum(var, 0.0)
    return mape + variance_penalty * jnp.sqrt(var)


def _reference(output, target, variance_penalty):
    diff = target - output
    mape = jnp.mean(jnp.abs(diff / target))
    if output.shape[0] > 1:
        return mape + variance_penalty * jnp.std(diff, ddof=1)
    return mape


if __name__ == "__main__":
    key = jax.random.PRNGKey(0)
    k1, k2, k3, k4, k5, k6 = jax.random.split(key, 6)
    vp = 0.1  # deterministic hyperparameter (module default is 0.0)

    # Case 1: (time=16, batch=4, nvar=32) -> 2048 elems, zero-copy path,
    # single block, mask-free hot path.
    shape1 = (16, 4, 32)
    t1 = jax.random.uniform(k1, shape1, jnp.float32, minval=1.0, maxval=2.0)
    o1 = t1 + 0.1 * jax.random.normal(k2, shape1, jnp.float32)
    loss1 = mape_loss(o1, t1, vp, force_pallas=True)

    # Case 2: ragged element count (n % 128 != 0), multiple row-blocks with a
    # masked partial last block (block_sub shrunk to force it).
    shape2 = (40, 8, 19)
    t2 = jax.random.uniform(k3, shape2, jnp.float32, minval=1.0, maxval=2.0)
    o2 = t2 + 0.1 * jax.random.normal(k4, shape2, jnp.float32)
    loss2 = mape_loss(o2, t2, vp, block_sub=32, force_pallas=True)

    # Case 3: len(output) == 1 branch (no std term), ragged, default block_sub.
    shape3 = (1, 8, 37)
    t3 = jax.random.uniform(k5, shape3, jnp.float32, minval=1.0, maxval=2.0)
    o3 = t3 + 0.1 * jax.random.normal(k6, shape3, jnp.float32)
    loss3 = mape_loss(o3, t3, vp, force_pallas=True)

    jax.block_until_ready((loss1, loss2, loss3))

    r1 = _reference(o1, t1, vp)
    r2 = _reference(o2, t2, vp)
    r3 = _reference(o3, t3, vp)
    assert jnp.allclose(loss1, r1, rtol=1e-4, atol=1e-6), (loss1, r1)
    assert jnp.allclose(loss2, r2, rtol=1e-4, atol=1e-6), (loss2, r2)
    assert jnp.allclose(loss3, r3, rtol=1e-4, atol=1e-6), (loss3, r3)

    print("KERNEL_OK")
</pallas_src>

<mosaic_0001>
module attributes {stable_mosaic.version = 11 : i64} {
  func.func @kernel(%arg0: i32, %arg1: i32, %arg2: memref<16x128xf32, #tpu.memory_space<vmem>>, %arg3: memref<16x128xf32, #tpu.memory_space<vmem>>, %arg4: memref<1x3x8x128xf32, #tpu.memory_space<vmem>>) attributes {dimension_semantics = [#tpu.dimension_semantics<parallel>, #tpu.dimension_semantics<arbitrary>], iteration_bounds = array<i64: 1, 1>, scalar_prefetch = 0 : i64, scratch_operands = 0 : i64, tpu.core_type = #tpu.core_type<tc>, window_params = [{transform_indices = @transform_0, window_bounds = array<i64: 16, 128>}, {transform_indices = @transform_1, window_bounds = array<i64: 16, 128>}, {transform_indices = @transform_2, window_bounds = array<i64: 1, 3, 8, 128>}]} {
    %c0_i32 = arith.constant 0 : i32
    %0 = arith.cmpi eq, %arg1, %c0_i32 : i32
    %1 = arith.extui %0 : i1 to i32
    %c0_i32_0 = arith.constant 0 : i32
    %2 = arith.cmpi ne, %1, %c0_i32_0 : i32
    scf.if %2 {
      %cst_29 = arith.constant 0.000000e+00 : f32
      %38 = vector.broadcast %cst_29 : f32 to vector<3x8x128xf32>
      %c0_30 = arith.constant 0 : index
      %c0_31 = arith.constant 0 : index
      %c0_32 = arith.constant 0 : index
      %c0_33 = arith.constant 0 : index
      %39 = vector.load %arg4[%c0_30, %c0_31, %c0_32, %c0_33] : memref<1x3x8x128xf32, #tpu.memory_space<vmem>>, vector<1x3x8x128xf32>
      %40 = vector.shape_cast %39 : vector<1x3x8x128xf32> to vector<3x8x128xf32>
      %41 = vector.shape_cast %38 : vector<3x8x128xf32> to vector<1x3x8x128xf32>
      tpu.vector_store %arg4[%c0_30, %c0_31, %c0_32, %c0_33], %41 {strides = array<i32>} : memref<1x3x8x128xf32, #tpu.memory_space<vmem>>, vector<1x3x8x128xf32>,
    } else {
    }
    %c0 = arith.constant 0 : index
    %c0_1 = arith.constant 0 : index
    %3 = vector.load %arg2[%c0, %c0_1] : memref<16x128xf32, #tpu.memory_space<vmem>>, vector<16x128xf32>
    %c0_2 = arith.constant 0 : index
    %c0_3 = arith.constant 0 : index
    %4 = vector.load %arg3[%c0_2, %c0_3] : memref<16x128xf32, #tpu.memory_space<vmem>>, vector<16x128xf32>
    %5 = arith.subf %4, %3 : vector<16x128xf32>
    %6 = tpu.reciprocal %4 {approx = true} : vector<16x128xf32> -> vector<16x128xf32>
    %7 = arith.mulf %4, %6 : vector<16x128xf32>
    %cst = arith.constant 2.000000e+00 : f32
    %8 = vector.broadcast %cst : f32 to vector<16x128xf32>
    %9 = arith.subf %8, %7 : vector<16x128xf32>
    %10 = arith.mulf %6, %9 : vector<16x128xf32>
    %11 = arith.mulf %5, %10 : vector<16x128xf32>
    %12 = math.absf %11 : vector<16x128xf32>
    %13 = arith.mulf %5, %5 : vector<16x128xf32>
    %c0_4 = arith.constant 0 : index
    %c0_5 = arith.constant 0 : index
    %c0_6 = arith.constant 0 : index
    %c0_7 = arith.constant 0 : index
    %14 = vector.load %arg4[%c0_4, %c0_5, %c0_6, %c0_7] : memref<1x3x8x128xf32, #tpu.memory_space<vmem>>, vector<1x1x8x128xf32>
    %15 = vector.shape_cast %14 : vector<1x1x8x128xf32> to vector<8x128xf32>
    %16 = vector.shape_cast %12 : vector<16x128xf32> to vector<2x8x128xf32>
    %cst_8 = arith.constant dense<0.000000e+00> : vector<8x128xf32>
    %17 = vector.multi_reduction <add>, %16, %cst_8 [0] : vector<2x8x128xf32> to vector<8x128xf32>
    %18 = arith.addf %15, %17 : vector<8x128xf32>
    %c0_9 = arith.constant 0 : index
    %c0_10 = arith.constant 0 : index
    %c0_11 = arith.constant 0 : index
    %c0_12 = arith.constant 0 : index
    %19 = vector.load %arg4[%c0_9, %c0_10, %c0_11, %c0_12] : memref<1x3x8x128xf32, #tpu.memory_space<vmem>>, vector<1x1x8x128xf32>
    %20 = vector.shape_cast %19 : vector<1x1x8x128xf32> to vector<8x128xf32>
    %21 = vector.shape_cast %18 : vector<8x128xf32> to vector<1x1x8x128xf32>
    tpu.vector_store %arg4[%c0_9, %c0_10, %c0_11, %c0_12], %21 {strides = array<i32>} : memref<1x3x8x128xf32, #tpu.memory_space<vmem>>, vector<1x1x8x128xf32>,
    %c0_13 = arith.constant 0 : index
    %c1 = arith.constant 1 : index
    %c0_14 = arith.constant 0 : index
    %c0_15 = arith.constant 0 : index
    %22 = vector.load %arg4[%c0_13, %c1, %c0_14, %c0_15] : memref<1x3x8x128xf32, #tpu.memory_space<vmem>>, vector<1x1x8x128xf32>
    %23 = vector.shape_cast %22 : vector<1x1x8x128xf32> to vector<8x128xf32>
    %24 = vector.shape_cast %5 : vector<16x128xf32> to vector<2x8x128xf32>
    %cst_16 = arith.constant dense<0.000000e+00> : vector<8x128xf32>
    %25 = vector.multi_reduction <add>, %24, %cst_16 [0] : vector<2x8x128xf32> to vector<8x128xf32>
    %26 = arith.addf %23, %25 : vector<8x128xf32>
    %c0_17 = arith.constant 0 : index
    %c1_18 = arith.constant 1 : index
    %c0_19 = arith.constant 0 : index
    %c0_20 = arith.constant 0 : index
    %27 = vector.load %arg4[%c0_17, %c1_18, %c0_19, %c0_20] : memref<1x3x8x128xf32, #tpu.memory_space<vmem>>, vector<1x1x8x128xf32>
    %28 = vector.shape_cast %27 : vector<1x1x8x128xf32> to vector<8x128xf32>
    %29 = vector.shape_cast %26 : vector<8x128xf32> to vector<1x1x8x128xf32>
    tpu.vector_store %arg4[%c0_17, %c1_18, %c0_19, %c0_20], %29 {strides = array<i32>} : memref<1x3x8x128xf32, #tpu.memory_space<vmem>>, vector<1x1x8x128xf32>,
    %c0_21 = arith.constant 0 : index
    %c2 = arith.constant 2 : index
    %c0_22 = arith.constant 0 : index
    %c0_23 = arith.constant 0 : index
    %30 = vector.load %arg4[%c0_21, %c2, %c0_22, %c0_23] : memref<1x3x8x128xf32, #tpu.memory_space<vmem>>, vector<1x1x8x128xf32>
    %31 = vector.shape_cast %30 : vector<1x1x8x128xf32> to vector<8x128xf32>
    %32 = vector.shape_cast %13 : vector<16x128xf32> to vector<2x8x128xf32>
    %cst_24 = arith.constant dense<0.000000e+00> : vector<8x128xf32>
    %33 = vector.multi_reduction <add>, %32, %cst_24 [0] : vector<2x8x128xf32> to vector<8x128xf32>
    %34 = arith.addf %31, %33 : vector<8x128xf32>
    %c0_25 = arith.constant 0 : index
    %c2_26 = arith.constant 2 : index
    %c0_27 = arith.constant 0 : index
    %c0_28 = arith.constant 0 : index
    %35 = vector.load %arg4[%c0_25, %c2_26, %c0_27, %c0_28] : memref<1x3x8x128xf32, #tpu.memory_space<vmem>>, vector<1x1x8x128xf32>
    %36 = vector.shape_cast %35 : vector<1x1x8x128xf32> to vector<8x128xf32>
    %37 = vector.shape_cast %34 : vector<8x128xf32> to vector<1x1x8x128xf32>
    tpu.vector_store %arg4[%c0_25, %c2_26, %c0_27, %c0_28], %37 {strides = array<i32>} : memref<1x3x8x128xf32, #tpu.memory_space<vmem>>, vector<1x1x8x128xf32>,
    return
  }
  func.func @transform_0(%arg0: i32, %arg1: i32) -> (i32, i32) {
    %c1_i32 = arith.constant 1 : i32
    %0 = arith.muli %arg0, %c1_i32 : i32
    %1 = arith.addi %0, %arg1 : i32
    %c0_i32 = arith.constant 0 : i32
    %2 = arith.minsi %1, %c0_i32 : i32
    %c0_i32_0 = arith.constant 0 : i32
    %c0_i32_1 = arith.constant 0 : i32
    return %2, %c0_i32_0 : i32, i32
  }
  func.func @transform_1(%arg0: i32, %arg1: i32) -> (i32, i32) {
    %c1_i32 = arith.constant 1 : i32
    %0 = arith.muli %arg0, %c1_i32 : i32
    %1 = arith.addi %0, %arg1 : i32
    %c0_i32 = arith.constant 0 : i32
    %2 = arith.minsi %1, %c0_i32 : i32
    %c0_i32_0 = arith.constant 0 : i32
    %c0_i32_1 = arith.constant 0 : i32
    return %2, %c0_i32_0 : i32, i32
  }
  func.func @transform_2(%arg0: i32, %arg1: i32) -> (i32, i32, i32, i32) {
    %c0_i32 = arith.constant 0 : i32
    %c0_i32_0 = arith.constant 0 : i32
    %c0_i32_1 = arith.constant 0 : i32
    %c0_i32_2 = arith.constant 0 : i32
    return %arg0, %c0_i32, %c0_i32_0, %c0_i32_1 : i32, i32, i32, i32
  }
}

</mosaic_0001>

<bundles_post_ra>
// kernel: mape_loss.1
= control target key start
LH: loop header
LB: loop body
LE: loop exit
PB: predicated region body
PF: predicated region fallthrough
CT: control target
= control target key end

     0   :  { %s177_s0 = inlined_call_operand.vmem [shape: f32[16,128], index: 0, kind: input, shape index: {}]   ;;  %s178_s1 = inlined_call_operand.vmem [shape: f32[16,128], index: 1, kind: input, shape index: {}]   ;;  %s179_s2 = inlined_call_operand.vmem [shape: f32[1,3,8,128], index: 2, kind: output, shape index: {}]  }
   0x1   :  { %v82_v0 = vld [vmem:[%s177_s0] sm:$0xff]  ;;  %v83_v1 = vld [vmem:[%s177_s0 + $0x8] sm:$0xff] }
   0x2   :  { %v84_v2 = vld [vmem:[%s178_s1] sm:$0xff]  ;;  %v85_v3 = vld [vmem:[%s178_s1 + $0x8] sm:$0xff] }
   0x3   :  { %v86_v4 = vsub.f32 %v84_v2, %v82_v0  ;;  %137 = vrcp.f32 %v84_v2  ;;  %v87_v5 = vsub.f32 %v85_v3, %v83_v1 }
   0x4   :  { %139 = vrcp.f32 %v85_v3 }
   0x5   :  { %v100_v6 = vmul.f32 %v86_v4, %v86_v4  ;;  %v108_v7 = vadd.f32 %v87_v5, %v86_v4  ;;  %v101_v8 = vmul.f32 %v87_v5, %v87_v5 }
   0x7   :  { %v113_v9 = vadd.f32 %v101_v8, %v100_v6  ;;  %133 = vst [vmem:[%s179_s2 + $0x8] sm:$0xff] %v108_v7 }
   0x9   :  { %135 = vst [vmem:[%s179_s2 + $0x10] sm:$0xff] %v113_v9 }
  0x10   :  { %v138_v10 = vpop.eup %137 }
  0x11   :  { %v140_v11 = vpop.eup %139  ;;  %v90_v12 = vmul.f32 %v138_v10, %v84_v2 }
  0x12   :  { %v91_v13 = vmul.f32 %v140_v11, %v85_v3 }
  0x13   :  { %v92_v14 = vsub.f32 2.0, %v90_v12 }
  0x14   :  { %v93_v15 = vsub.f32 2.0, %v91_v13 }
  0x15   :  { %v94_v16 = vmul.f32 %v138_v10, %v92_v14 }
  0x16   :  { %v95_v17 = vmul.f32 %v140_v11, %v93_v15 }
  0x17   :  { %v96_v18 = vmul.f32 %v94_v16, %v86_v4 }
  0x18   :  { %v97_v19 = vmul.f32 %v95_v17, %v87_v5 }
  0x19   :  { %v98_v20 = vand.u32 2147483647, %v96_v18 }
  0x1a   :  { %v99_v21 = vand.u32 2147483647, %v97_v19 }
  0x1c   :  { %v103_v22 = vadd.f32 %v99_v21, %v98_v20 }
  0x1e   :  { %105 = vst [vmem:[%s179_s2] sm:$0xff] %v103_v22 }

</bundles_post_ra>
